<compile_context>
chip_gen: v6e
topology: v6e:2x2x1
jax: 0.10.0
libtpu: 0.0.40
codegen_flags: <defaults>
</compile_context>

<pallas_src>
import functools
import math

import jax
import jax.numpy as jnp
from jax.experimental import pallas as pl
from jax.experimental.pallas import tpu as pltpu


def _sdpa_kernel(q_ref, k_ref, v_ref, mask_ref, out_ref, attn_ref, *, inv_temperature):
    # q_ref: (H, lq, dk)  k_ref: (H, lk, dk)  v_ref: (H, lk, dv)
    # mask_ref: (H, Lm, lk) int32, Lm in {1, lq}
    q = q_ref[...]
    k = k_ref[...]
    v = v_ref[...]
    m = mask_ref[...]

    # scores = (q @ k^T) / temperature  -- batched over the packed head dim,
    # operands stay in their input dtype (bf16 hits full MXU rate), f32 accumulate.
    scores = jnp.einsum(
        "hqd,hkd->hqk", q, k, preferred_element_type=jnp.float32
    ) * jnp.float32(inv_temperature)                          # (H, lq, lk) f32

    # masked_fill(mask == 0, -1e9); mask broadcasts (H, Lm, lk) -> (H, lq, lk).
    scores = jnp.where(m == 0, jnp.float32(-1e9), scores)

    # Numerically stable softmax along the key axis, in f32.
    scores_max = jnp.max(scores, axis=-1, keepdims=True)
    e = jnp.exp(scores - scores_max)
    denom = jnp.sum(e, axis=-1, keepdims=True)
    # EUP approximate reciprocal (free slot) + one Newton step -> ~f32 accuracy.
    r = pl.reciprocal(denom, approx=True)
    r = r * (jnp.float32(2.0) - denom * r)
    attn = e * r                                              # (H, lq, lk) f32

    # output = attn @ v  (probabilities cast to v.dtype for the MXU, f32 acc).
    out = jnp.einsum(
        "hqk,hkd->hqd", attn.astype(v.dtype), v, preferred_element_type=jnp.float32
    )                                                         # (H, lq, dv)

    attn_ref[...] = attn.astype(attn_ref.dtype)
    out_ref[...] = out.astype(out_ref.dtype)


def _heads_per_block(B, lq, lk, dk, dv, Lm, itemsize):
    """Pick how many (batch*head) slices to process per grid step.

    Bounded by a conservative VMEM working-set budget so it stays safe on v7x
    (32 MiB default-scoped VMEM, double-buffered blocks), and capped so that we
    keep at least 2 grid steps for megacore sharding of the parallel axis.
    """
    per_head = (
        (lq * dk + lk * dk + lk * dv + lq * dv + lq * lk) * itemsize  # q,k,v,out,attn
        + Lm * lk * 4        # int32 mask block
        + 2 * lq * lk * 4    # live f32 scores/probs inside the kernel
    )
    budget = 6 * 1024 * 1024  # per-buffer budget; ~2x with double buffering
    h = max(1, min(B, budget // max(per_head, 1)))
    if B >= 2:
        h = min(h, max(1, B // 2))
    while B % h:
        h -= 1
    return h


def scaled_dot_product_attention(q, k, v, temperature, mask=None):
    """q, k: (b, n, lq/lk, dk); v: (b, n, lk, dv); mask broadcastable to (b, n, lq, lk).

    Returns (output, attn) with the same semantics as the PyTorch module in eval mode.
    """
    b, n, lq, dk = q.shape
    lk = k.shape[2]
    dv = v.shape[3]
    B = b * n

    qf = q.reshape(B, lq, dk)
    kf = k.reshape(B, lk, dk)
    vf = v.reshape(B, lk, dv)

    # Keep the mask un-expanded along the query axis: only broadcast over the
    # (small) head axis.  Lm is 1 for (b,1,1,lk) padding masks, lq otherwise.
    if mask is None:
        Lm = 1
        mf = jnp.ones((B, 1, lk), dtype=jnp.int32)
    else:
        m4 = jnp.asarray(mask)
        if m4.ndim == 2:
            m4 = m4[None, None]
        elif m4.ndim == 3:
            m4 = m4[:, None]
        Lm = m4.shape[2]
        mf = jnp.broadcast_to(m4 != 0, (b, n, Lm, lk)).reshape(B, Lm, lk).astype(jnp.int32)

    H = _heads_per_block(B, lq, lk, dk, dv, Lm, jnp.dtype(q.dtype).itemsize)
    grid = (B // H,)

    kernel = functools.partial(_sdpa_kernel, inv_temperature=1.0 / float(temperature))

    out_f, attn_f = pl.pallas_call(
        kernel,
        out_shape=(
            jax.ShapeDtypeStruct((B, lq, dv), q.dtype),
            jax.ShapeDtypeStruct((B, lq, lk), q.dtype),
        ),
        grid_spec=pltpu.PrefetchScalarGridSpec(
            num_scalar_prefetch=0,
            grid=grid,
            in_specs=[
                pl.BlockSpec((H, lq, dk), lambda i: (i, 0, 0)),
                pl.BlockSpec((H, lk, dk), lambda i: (i, 0, 0)),
                pl.BlockSpec((H, lk, dv), lambda i: (i, 0, 0)),
                pl.BlockSpec((H, Lm, lk), lambda i: (i, 0, 0)),
            ],
            out_specs=[
                pl.BlockSpec((H, lq, dv), lambda i: (i, 0, 0)),
                pl.BlockSpec((H, lq, lk), lambda i: (i, 0, 0)),
            ],
        ),
        compiler_params=pltpu.CompilerParams(
            dimension_semantics=("parallel",),
        ),
    )(qf, kf, vf, mf)

    return out_f.reshape(b, n, lq, dv), attn_f.reshape(b, n, lq, lk)


def _reference(q, k, v, temperature, mask=None):
    attn = jnp.einsum("bnqd,bnkd->bnqk", q / temperature, k)
    if mask is not None:
        attn = jnp.where(mask == 0, -1e9, attn)
    attn = jax.nn.softmax(attn, axis=-1)
    out = jnp.einsum("bnqk,bnkd->bnqd", attn, v)
    return out, attn


if __name__ == "__main__":
    key = jax.random.PRNGKey(0)
    b, n, lq, dk, dv = 2, 2, 8, 32, 32
    lk = lq
    temperature = math.sqrt(dk)

    kq, kk, kv, km1, km2 = jax.random.split(key, 5)
    q = jax.random.normal(kq, (b, n, lq, dk), dtype=jnp.float32)
    k = jax.random.normal(kk, (b, n, lk, dk), dtype=jnp.float32)
    v = jax.random.normal(kv, (b, n, lk, dv), dtype=jnp.float32)

    # Case 1: padding mask (b, 1, 1, lk), like the module docstring.
    mask1 = (jax.random.uniform(km1, (b, 1, 1, lk)) > 0.2).astype(jnp.int32)
    out1, attn1 = scaled_dot_product_attention(q, k, v, temperature, mask1)
    out1 = jax.block_until_ready(out1)
    attn1 = jax.block_until_ready(attn1)
    out1_ref, attn1_ref = _reference(q, k, v, temperature, mask1)
    assert jnp.allclose(out1, out1_ref, atol=1e-4, rtol=1e-4)
    assert jnp.allclose(attn1, attn1_ref, atol=1e-4, rtol=1e-4)

    # Case 2: per-query mask (b, 1, lq, lk), like the second docstring shape.
    causal = jnp.tril(jnp.ones((lq, lk), dtype=jnp.int32))
    mask2 = jnp.broadcast_to(causal, (b, 1, lq, lk))
    out2, attn2 = scaled_dot_product_attention(q, k, v, temperature, mask2)
    out2 = jax.block_until_ready(out2)
    attn2 = jax.block_until_ready(attn2)
    out2_ref, attn2_ref = _reference(q, k, v, temperature, mask2)
    assert jnp.allclose(out2, out2_ref, atol=1e-4, rtol=1e-4)
    assert jnp.allclose(attn2, attn2_ref, atol=1e-4, rtol=1e-4)

    # Case 3: no mask.
    out3, attn3 = scaled_dot_product_attention(q, k, v, temperature, None)
    out3 = jax.block_until_ready(out3)
    out3_ref, attn3_ref = _reference(q, k, v, temperature, None)
    assert jnp.allclose(out3, out3_ref, atol=1e-4, rtol=1e-4)
    assert jnp.allclose(attn3, attn3_ref, atol=1e-4, rtol=1e-4)

    print("KERNEL_OK")
</pallas_src>

<mosaic_0001>
module attributes {stable_mosaic.version = 11 : i64} {
  func.func @_sdpa_kernel(%arg0: i32, %arg1: memref<2x8x32xf32, #tpu.memory_space<vmem>>, %arg2: memref<2x8x32xf32, #tpu.memory_space<vmem>>, %arg3: memref<2x8x32xf32, #tpu.memory_space<vmem>>, %arg4: memref<2x1x8xi32, #tpu.memory_space<vmem>>, %arg5: memref<2x8x32xf32, #tpu.memory_space<vmem>>, %arg6: memref<2x8x8xf32, #tpu.memory_space<vmem>>) attributes {dimension_semantics = [#tpu.dimension_semantics<parallel>], iteration_bounds = array<i64: 2>, scalar_prefetch = 0 : i64, scratch_operands = 0 : i64, tpu.core_type = #tpu.core_type<tc>, window_params = [{transform_indices = @transform_0, window_bounds = array<i64: 2, 8, 32>}, {transform_indices = @transform_1, window_bounds = array<i64: 2, 8, 32>}, {transform_indices = @transform_2, window_bounds = array<i64: 2, 8, 32>}, {transform_indices = @transform_3, window_bounds = array<i64: 2, 1, 8>}, {transform_indices = @transform_4, window_bounds = array<i64: 2, 8, 32>}, {transform_indices = @transform_5, window_bounds = array<i64: 2, 8, 8>}]} {
    %c0 = arith.constant 0 : index
    %c0_0 = arith.constant 0 : index
    %c0_1 = arith.constant 0 : index
    %0 = vector.load %arg1[%c0, %c0_0, %c0_1] : memref<2x8x32xf32, #tpu.memory_space<vmem>>, vector<2x8x32xf32>
    %c0_2 = arith.constant 0 : index
    %c0_3 = arith.constant 0 : index
    %c0_4 = arith.constant 0 : index
    %1 = vector.load %arg2[%c0_2, %c0_3, %c0_4] : memref<2x8x32xf32, #tpu.memory_space<vmem>>, vector<2x8x32xf32>
    %c0_5 = arith.constant 0 : index
    %c0_6 = arith.constant 0 : index
    %c0_7 = arith.constant 0 : index
    %2 = vector.load %arg3[%c0_5, %c0_6, %c0_7] : memref<2x8x32xf32, #tpu.memory_space<vmem>>, vector<2x8x32xf32>
    %c0_8 = arith.constant 0 : index
    %c0_9 = arith.constant 0 : index
    %c0_10 = arith.constant 0 : index
    %3 = vector.load %arg4[%c0_8, %c0_9, %c0_10] : memref<2x1x8xi32, #tpu.memory_space<vmem>>, vector<2x1x8xi32>
    "tpu.trace_start"() <{level = 10 : i32, message = "hqd,hkd->hqk"}> : () -> ()
    %cst = arith.constant dense<0.000000e+00> : vector<2x8x8xf32>
    %4 = tpu.matmul %0, %1, %cst {dimension_numbers = #tpu.dot_dimension_numbers<[2], [2], [1], [1], [0, 0, 0, 1, 1, 1], [0], [0]>} : vector<2x8x32xf32>, vector<2x8x32xf32>, vector<2x8x8xf32> -> vector<2x8x8xf32>
    "tpu.trace_stop"() : () -> ()
    %cst_11 = arith.constant 0.176776692 : f32
    %5 = vector.broadcast %cst_11 : f32 to vector<2x8x8xf32>
    %6 = arith.mulf %4, %5 : vector<2x8x8xf32>
    %c0_i32 = arith.constant 0 : i32
    %7 = vector.broadcast %c0_i32 : i32 to vector<2x1x8xi32>
    %8 = arith.cmpi eq, %3, %7 : vector<2x1x8xi32>
    %cst_12 = arith.constant -1.000000e+09 : f32
    %9 = vector.shape_cast %8 : vector<2x1x8xi1> to vector<2x1x8xi1>
    %10 = vector.broadcast %9 : vector<2x1x8xi1> to vector<2x8x8xi1>
    %11 = vector.broadcast %cst_12 : f32 to vector<2x8x8xf32>
    %12 = arith.select %10, %11, %6 : vector<2x8x8xi1>, vector<2x8x8xf32>
    %cst_13 = arith.constant dense<0xFF800000> : vector<2x8xf32>
    %13 = vector.multi_reduction <maximumf>, %12, %cst_13 [2] : vector<2x8x8xf32> to vector<2x8xf32>
    %14 = vector.shape_cast %13 : vector<2x8xf32> to vector<2x8x1xf32>
    %15 = vector.broadcast %14 : vector<2x8x1xf32> to vector<2x8x8xf32>
    %16 = arith.subf %12, %15 : vector<2x8x8xf32>
    %17 = math.exp %16 : vector<2x8x8xf32>
    %cst_14 = arith.constant dense<0.000000e+00> : vector<2x8xf32>
    %18 = vector.multi_reduction <add>, %17, %cst_14 [2] : vector<2x8x8xf32> to vector<2x8xf32>
    %19 = vector.shape_cast %18 : vector<2x8xf32> to vector<2x8x1xf32>
    %20 = tpu.reciprocal %19 {approx = true} : vector<2x8x1xf32> -> vector<2x8x1xf32>
    %21 = arith.mulf %19, %20 : vector<2x8x1xf32>
    %cst_15 = arith.constant 2.000000e+00 : f32
    %22 = vector.broadcast %cst_15 : f32 to vector<2x8x1xf32>
    %23 = arith.subf %22, %21 : vector<2x8x1xf32>
    %24 = arith.mulf %20, %23 : vector<2x8x1xf32>
    %25 = vector.broadcast %24 : vector<2x8x1xf32> to vector<2x8x8xf32>
    %26 = arith.mulf %17, %25 : vector<2x8x8xf32>
    "tpu.trace_start"() <{level = 10 : i32, message = "hqk,hkd->hqd"}> : () -> ()
    %cst_16 = arith.constant dense<0.000000e+00> : vector<2x8x32xf32>
    %27 = tpu.matmul %26, %2, %cst_16 {dimension_numbers = #tpu.dot_dimension_numbers<[2], [1], [1], [2], [0, 0, 0, 1, 1, 2], [0], [0]>} : vector<2x8x8xf32>, vector<2x8x32xf32>, vector<2x8x32xf32> -> vector<2x8x32xf32>
    "tpu.trace_stop"() : () -> ()
    %c0_17 = arith.constant 0 : index
    %c0_18 = arith.constant 0 : index
    %c0_19 = arith.constant 0 : index
    %28 = vector.load %arg6[%c0_17, %c0_18, %c0_19] : memref<2x8x8xf32, #tpu.memory_space<vmem>>, vector<2x8x8xf32>
    tpu.vector_store %arg6[%c0_17, %c0_18, %c0_19], %26 {strides = array<i32>} : memref<2x8x8xf32, #tpu.memory_space<vmem>>, vector<2x8x8xf32>,
    %c0_20 = arith.constant 0 : index
    %c0_21 = arith.constant 0 : index
    %c0_22 = arith.constant 0 : index
    %29 = vector.load %arg5[%c0_20, %c0_21, %c0_22] : memref<2x8x32xf32, #tpu.memory_space<vmem>>, vector<2x8x32xf32>
    tpu.vector_store %arg5[%c0_20, %c0_21, %c0_22], %27 {strides = array<i32>} : memref<2x8x32xf32, #tpu.memory_space<vmem>>, vector<2x8x32xf32>,
    return
  }
  func.func @transform_0(%arg0: i32) -> (i32, i32, i32) {
    %c0_i32 = arith.constant 0 : i32
    %c0_i32_0 = arith.constant 0 : i32
    %c0_i32_1 = arith.constant 0 : i32
    return %arg0, %c0_i32, %c0_i32_0 : i32, i32, i32
  }
  func.func @transform_1(%arg0: i32) -> (i32, i32, i32) {
    %c0_i32 = arith.constant 0 : i32
    %c0_i32_0 = arith.constant 0 : i32
    %c0_i32_1 = arith.constant 0 : i32
    return %arg0, %c0_i32, %c0_i32_0 : i32, i32, i32
  }
  func.func @transform_2(%arg0: i32) -> (i32, i32, i32) {
    %c0_i32 = arith.constant 0 : i32
    %c0_i32_0 = arith.constant 0 : i32
    %c0_i32_1 = arith.constant 0 : i32
    return %arg0, %c0_i32, %c0_i32_0 : i32, i32, i32
  }
  func.func @transform_3(%arg0: i32) -> (i32, i32, i32) {
    %c0_i32 = arith.constant 0 : i32
    %c0_i32_0 = arith.constant 0 : i32
    %c0_i32_1 = arith.constant 0 : i32
    return %arg0, %c0_i32, %c0_i32_0 : i32, i32, i32
  }
  func.func @transform_4(%arg0: i32) -> (i32, i32, i32) {
    %c0_i32 = arith.constant 0 : i32
    %c0_i32_0 = arith.constant 0 : i32
    %c0_i32_1 = arith.constant 0 : i32
    return %arg0, %c0_i32, %c0_i32_0 : i32, i32, i32
  }
  func.func @transform_5(%arg0: i32) -> (i32, i32, i32) {
    %c0_i32 = arith.constant 0 : i32
    %c0_i32_0 = arith.constant 0 : i32
    %c0_i32_1 = arith.constant 0 : i32
    return %arg0, %c0_i32, %c0_i32_0 : i32, i32, i32
  }
}

</mosaic_0001>

<bundles_post_ra>
// kernel: tpu_custom_call.1
= control target key start
LH: loop header
LB: loop body
LE: loop exit
PB: predicated region body
PF: predicated region fallthrough
CT: control target
= control target key end

     0   :  { %s1578_s0 = inlined_call_operand.hbm [shape: f32[4,8,32], index: 0, kind: input, shape index: {}]   ;;  %s1579_s1 = inlined_call_operand.hbm [shape: f32[4,8,32], index: 1, kind: input, shape index: {}]   ;;  %s1580_s2 = inlined_call_operand.hbm [shape: f32[4,8,32], index: 2, kind: input, shape index: {}]   ;;  %s1581_s3 = inlined_call_operand.vmem [shape: s32[4,1,8], index: 3, kind: input, shape index: {}]   ;;  %s1582_s4 = inlined_call_operand.hbm [shape: f32[4,8,32], index: 4, kind: output, shape index: {0}]   ;;  %s1583_s5 = inlined_call_operand.hbm [shape: f32[4,8,8], index: 5, kind: output, shape index: {1}]  }
   0x1   :  { %1592 = sst [smem:[#allocation17_spill]] %s1578_s0 }
   0x2   :  { %1593 = sst [smem:[#allocation18_spill]] %s1579_s1 }
   0x3   :  { %11 = vsyncpa [#allocation3], 0 }
   0x4   :  { %13 = vsyncpa [#allocation3 + $0x1], 0 }
   0x5   :  { %14 = vsyncpa [#allocation6], 0 }
   0x6   :  { %16 = vsyncpa [#allocation6 + $0x1], 0 }
   0x7   :  { %17 = vsyncpa [#allocation4], 0 }
   0x8   :  { %19 = vsyncpa [#allocation4 + $0x1], 0 }
   0x9   :  { %20 = vsyncpa [#allocation10], 0 }
   0xa   :  { %22 = vsyncpa [#allocation10 + $0x1], 0  ;;  %s1273_s18 = smov 0   ;;  %s1275_s19 = smov 0  }
   0xb   :  { %s1277_s20 = smov 0   ;;  %s1279_s21 = smov 0  }
   0xc LB: > { %1594 = sst [smem:[#allocation15_spill]] %s1225_s20  ;;  %s1294_s22 = sadd.s32 4294967295, %s1229_s21   ;;  %s1229_s21 = sphi %s1279_s21, %s1617_s21   ;;  %s1225_s20 = sphi %s1277_s20, %s1614_s20   ;;  %s1221_s19 = sphi %s1275_s19, %s1616_s19   ;;  %s1217_s18 = sphi %s1273_s18, %s1615_s18  }
   0xd   : > { %s905_s23 = sadd.s32 4294967294, %s1229_s21   ;;  %s1298_s24 = sadd.s32 1, %s1229_s21  }
   0xe   : > { %s35_s25 = sadd.s32 1, %s1225_s20  ;;  %s32_s26 = ssub.s32 %s1229_s21, %s1298_s24 }
   0xf   : > { %p42_p0 = scmp.ne.s32.totalorder %s1225_s20, %s1221_s19  ;;  %p33_p1 = scmp.eq.s32.totalorder %s32_s26, 0 }
  0x10   : > { %p43_p2 = scmp.eq.s32.totalorder %s1229_s21, 0  ;;  %p48_p3 = scmp.ne.s32.totalorder %s1221_s19, %s1217_s18 }
  0x11   : > { %p49_p4 = scmp.eq.s32.totalorder %s1294_s22, 0  ;;  %p150_p7 = scmp.eq.s32.totalorder %s1294_s22, 1 }
  0x12   : > { %s1310_s27 = scalar_select %p33_p1, %s1225_s20, %s35_s25  }
  0x13   : > { %p44_p5 = por %p43_p2, %p42_p0  ;;  %p1312_p6 = por %p49_p4, %p48_p3 }
  0x14   : > { %1595 = sst [smem:[#allocation16_spill]] %s1310_s27  ;;  %p156_p8 = scmp.eq.s32.totalorder %s905_s23, 1 }
  0x15   : > { %s1596_s28 = scalar_select %p1312_p6, 1, 0 }
  0x16   : > { %p998_p10 = scmp.lt.s32.totalorder %s1229_s21, 2  ;;  %p1319_p11 = por %p150_p7, %p42_p0 }
  0x17   : > { %p1323_p12 = por %p156_p8, %p48_p3  ;;  %s1584_s6 = sand.u32 1, %s1225_s20  }
  0x18   : > { %s1597_s29 = scalar_select %p1319_p11, 1, 0 }
  0x19   : > { %s1598_s30 = scalar_select %p1323_p12, 1, 0 }
  0x1a   : > { %s1329_s7 = sshll.u32 %s1229_s21, 8  ;;  %s1333_s8 = sshll.u32 %s1584_s6, 4 }
  0x1b   : > { %p1335_p13 = pnand %p998_p10, %p44_p5  ;;  %s223_s10 = sand.u32 1, %s1229_s21  }
  0x1c   : > { %s1600_s1 = sld [smem:[#allocation18_spill]]  ;;  %s227_s14 = scalar_lea.vmem [#allocation5], %s1333_s8 }
  0x1d   : > { %s234_s15 = sshll.u32 %s227_s14, 4  ;;  %s1350_s16 = scalar_lea.sflag [#allocation6], %s223_s10  ;;  %s1347_s15 = int_to_ptr.vmem [resolvable:$true] %s234_s15 }
  0x1e   : > { %p1356_p2 = pneg %p1335_p13 }
  0x22   : > { %s1344_s13 = scalar_lea.hbm %s1600_s1, %s1329_s7  ;;  %s1052_s11 = scalar_lea.hbm %s1600_s1, 512 }
  0x23   : > { %s1047_s17 = scalar_lea.hbm %s1344_s13, 256  ;;  %p1053_p5 = scmp.lt.s32.totalorder %s1344_s13, %s1600_s1 }
  0x24   : > { %p1048_p1 = scmp.ne.s32.totalorder %s1344_s13, %s1047_s17  ;;  %p1054_p7 = scmp.lt.s32.totalorder %s1052_s11, %s1047_s17 }
  0x26   : > { %p1050_p3 = pnand %p1356_p2, %p1048_p1  ;;  %p1055_p8 = por %p1054_p7, %p1053_p5 }
  0x28   : > { %p1051_p4 = pneg %p1050_p3 }
  0x2a   : > { %p1056_p10 = pnand %p1055_p8, %p1051_p4 }
  0x2c   : > { %1059 = shalt.err (!%p1056_p10)
}
  0x2d   : > { %s1060_s10 = scalar_lea.vmem %s1347_s15, 256  ;;  %s1231_s6 = smov [#allocation5]  }
  0x2e   : > { %p1061_p9 = scmp.ne.s32.totalorder %s1347_s15, %s1060_s10  ;;  %s1065_s25 = sshll.u32 %s1231_s6, 4  ;;  %s1066_s25 = int_to_ptr.vmem [resolvable:$false] %s1065_s25 }
  0x2f   : > { %s1067_s26 = scalar_lea.vmem %s1066_s25, 512  ;;  %p1068_p0 = scmp.lt.s32.totalorder %s1347_s15, %s1066_s25 }
  0x30   : > { %p1063_p1 = pnand %p1061_p9, %p1356_p2  ;;  %p1069_p12 = scmp.lt.s32.totalorder %s1067_s26, %s1060_s10 }
  0x32   : > { %p1064_p3 = pneg %p1063_p1  ;;  %p1070_p11 = por %p1069_p12, %p1068_p0 }
  0x34   : > { %p1071_p6 = pnand %p1070_p11, %p1064_p3 }
  0x36   : > { %1074 = shalt.err (!%p1071_p6)
}
  0x37   : > { %s1587_s17 = smov 128   ;;  %s1589_s11 = smov 8  }
  0x38   : > { %987 = dma.hbm_to_vmem [thread:$0]  (!%p1335_p13), %s1344_s13, 256, %s1347_s15, %s1350_s16, %s1587_s17, %s1587_s17, %s1589_s11  }
  0x39   : > { %p271_p9 = scmp.lt.s32.totalorder %s1229_s21, 3  ;;  %s1602_s0 = sld [smem:[#allocation17_spill]] }
  0x3a   : > { %p1603_p6 = scmp.ge.s32.totalorder %s1229_s21, 1  ;;  %s206_s25 = scalar_lea.vmem [#allocation2], %s1333_s8 }
  0x3b   : > { %s213_s26 = sshll.u32 %s206_s25, 4  ;;  %s1605_s1 = sand.u32 1, %s1225_s20   ;;  %s1396_s26 = int_to_ptr.vmem [resolvable:$true] %s213_s26 }
  0x3c   : > { %p1391_p11 = pnand %p1603_p6, %p271_p9  ;;  %s203_s13 = scalar_lea.sflag [#allocation3], %s1605_s1 }
  0x3e   : > { %s1604_s10 = scalar_select %p1391_p11, 1, 0 }
  0x3f   : > { %s1387_s14 = scalar_lea.hbm %s1602_s0, %s1329_s7  ;;  %s1080_s17 = scalar_lea.hbm %s1602_s0, 512 }
  0x40   : > { %s1075_s15 = scalar_lea.hbm %s1387_s14, 256  ;;  %p1081_p5 = scmp.lt.s32.totalorder %s1387_s14, %s1602_s0 }
  0x41   : > { %p1076_p12 = scmp.ne.s32.totalorder %s1387_s14, %s1075_s15  ;;  %p1082_p7 = scmp.lt.s32.totalorder %s1080_s17, %s1075_s15 }
  0x43   : > { %p1078_p0 = pnand %p1076_p12, %p1356_p2  ;;  %p1083_p8 = por %p1082_p7, %p1081_p5 }
  0x45   : > { %p1079_p4 = pneg %p1078_p0 }
  0x47   : > { %p1084_p10 = pnand %p1083_p8, %p1079_p4 }
  0x49   : > { %1087 = shalt.err (!%p1084_p10)
}
  0x4a   : > { %s1088_s1 = scalar_lea.vmem %s1396_s26, 256  ;;  %s1234_s25 = smov [#allocation2]  }
  0x4b   : > { %p1089_p1 = scmp.ne.s32.totalorder %s1396_s26, %s1088_s1  ;;  %s1093_s6 = sshll.u32 %s1234_s25, 4  ;;  %s1094_s6 = int_to_ptr.vmem [resolvable:$false] %s1093_s6 }
  0x4c   : > { %s1095_s12 = scalar_lea.vmem %s1094_s6, 512  ;;  %p1096_p6 = scmp.lt.s32.totalorder %s1396_s26, %s1094_s6 }
  0x4d   : > { %p1091_p3 = pnand %p1089_p1, %p1356_p2  ;;  %p1097_p12 = scmp.lt.s32.totalorder %s1095_s12, %s1088_s1 }
  0x4f   : > { %p1092_p9 = pneg %p1091_p3  ;;  %p1098_p0 = por %p1097_p12, %p1096_p6 }
  0x51   : > { %p1099_p11 = pnand %p1098_p0, %p1092_p9 }
  0x53   : > { %1102 = shalt.err (!%p1099_p11)
}
  0x54   : > { %s1606_s27 = smov 8   ;;  %s1607_s17 = smov 128  }
  0x55   : > { %984 = dma.hbm_to_vmem [thread:$0]  (!%p1335_p13), %s1387_s14, 256, %s1396_s26, %s203_s13, %s1607_s17, %s1607_s17, %s1606_s27  }
  0x56   : > { %s1427_s25 = scalar_lea.hbm %s1580_s2, %s1329_s7  ;;  %s248_s1 = scalar_lea.vmem [#allocation7], %s1333_s8 }
  0x57   : > { %s255_s6 = sshll.u32 %s248_s1, 4  ;;  %s1103_s12 = scalar_lea.hbm %s1427_s25, 256  ;;  %s256_s6 = int_to_ptr.vmem [resolvable:$true] %s255_s6 }
  0x58   : > { %p1104_p11 = scmp.ne.s32.totalorder %s1427_s25, %s1103_s12  ;;  %s1108_s14 = scalar_lea.hbm %s1580_s2, 512 }
  0x59   : > { %p1109_p7 = scmp.lt.s32.totalorder %s1427_s25, %s1580_s2  ;;  %p1110_p8 = scmp.lt.s32.totalorder %s1108_s14, %s1103_s12 }
  0x5a   : > { %p1106_p4 = pnand %p1104_p11, %p1356_p2 }
  0x5b   : > { %p1111_p10 = por %p1110_p8, %p1109_p7 }
  0x5c   : > { %p1107_p5 = pneg %p1106_p4 }
  0x5e   : > { %p1112_p1 = pnand %p1111_p10, %p1107_p5 }
  0x60   : > { %1115 = shalt.err (!%p1112_p1)
}
  0x61   : > { %s1116_s7 = scalar_lea.vmem %s256_s6, 256  ;;  %s1235_s8 = smov [#allocation7]  }
  0x62   : > { %p1117_p3 = scmp.ne.s32.totalorder %s256_s6, %s1116_s7  ;;  %s1121_s11 = sshll.u32 %s1235_s8, 4  ;;  %s1122_s11 = int_to_ptr.vmem [resolvable:$false] %s1121_s11 }
  0x63   : > { %s1123_s15 = scalar_lea.vmem %s1122_s11, 512  ;;  %p1124_p12 = scmp.lt.s32.totalorder %s256_s6, %s1122_s11 }
  0x64   : > { %p1119_p9 = pnand %p1117_p3, %p1356_p2  ;;  %p1125_p0 = scmp.lt.s32.totalorder %s1123_s15, %s1116_s7 }
  0x66   : > { %p1120_p6 = pneg %p1119_p9  ;;  %p1126_p11 = por %p1125_p0, %p1124_p12 }
  0x68   : > { %p1127_p4 = pnand %p1126_p11, %p1120_p6 }
  0x6a   : > { %1130 = shalt.err (!%p1127_p4)
}
  0x6b   : > { %990 = dma.hbm_to_vmem [thread:$0]  (!%p1335_p13), %s1427_s25, 256, %s256_s6, %s1350_s16, %s1607_s17, %s1607_s17, %s1606_s27  }
  0x6c   : > { %p1608_p2 = scmp.ne.s32.totalorder %s1604_s10, 0 }
  0x6d   : > { %s1453_s0 = sand.u32 (!%p1608_p2), 1, %s1221_s19   ;;  %p1609_p5 = scmp.ne.s32.totalorder (!%p1608_p2), %s1596_s28, 0 }
  0x6e   : > { %275 = sbr.rel (%p1608_p2) target bundleno = 850 (0x352), region = 36  ;;  %s1456_s20 = sshll.u32 (!%p1608_p2), %s1453_s0, 4 }
  0x6f   : > { %s278_s23 = scalar_lea.sflag (!%p1608_p2), [#allocation3], %s1453_s0  ;;  %s281_s9 = scalar_lea.vmem (!%p1608_p2), [#allocation2], %s1456_s20 }
  0x73   : > { %1200 = dma.done.wait (%p1609_p5), %s278_s23, 256  }
  0x74   : > { %1202 = vsyncadd (%p1609_p5), %s278_s23, 4294967040  ;;  %s286_s16 = sand.u32 1, %s1294_s22   ;;  %s290_s27 = scalar_lea.vmem [#allocation5], %s1456_s20 }
  0x75   : > { %s287_s10 = scalar_lea.sflag [#allocation6], %s286_s16 }
  0x76   : > { %1204 = dma.done.wait (%p1609_p5), %s287_s10, 512  }
  0x77   : > { %1206 = vsyncadd (%p1609_p5), %s287_s10, 4294966784  ;;  %v1236_v0 = vmov 0.0   ;;  %vm1237_vm0 = vmmov 0   ;;  %vm363_vm1 = vcmask 261120   ;;  %v357_v1 = vld [vmem:[%s290_s27] sm:$0xff]  ;;  %v358_v2 = vld [vmem:[%s290_s27 + $0x8] sm:$0xff]  ;;  %v522_v5 = vlaneseq }
  0x78   : > { %951 = vmatprep.subr.mxu0 %v1236_v0  ;;  %956 = vmatprep.subr.mxu1 %v1236_v0  ;;  %v355_v3 = vld [vmem:[%s281_s9] sm:$0xff]  ;;  %v356_v4 = vld [vmem:[%s281_s9 + $0x8] sm:$0xff]  ;;  %s923_s28 = sshll.u32 %s1294_s22, 1  ;;  %v1238_v10 = vmov 0   ;;  %vm534_vm6 = vcmask 64512   ;;  %s299_s6 = scalar_lea.vmem [#allocation7], %s1456_s20 }
  0x79   : > { %953 = vmatprep.mubr.msk.f32.mxu0 %vm1237_vm0, %v1236_v0  ;;  %958 = vmatprep.mubr.msk.f32.mxu1 %vm1237_vm0, %v1236_v0  ;;  %p349_p13 = scmp.lt.s32.totalorder %s923_s28, 3  ;;  %v523_v8 = vshrl.u32 %v522_v5, 7  ;;  %v359_v35 = vld [vmem:[%s299_s6] sm:$0xff]  ;;  %v360_v36 = vld [vmem:[%s299_s6 + $0x8] sm:$0xff]  ;;  %s344_s12 = scalar_lea.vmem [#allocation9], %s1456_s20 }
  0x7a   : > { %952 = vmatpush3.xpose.msk.msra.mxu0 %vm363_vm1, %v357_v1  ;;  %957 = vmatpush3.xpose.msk.msra.mxu1 %vm363_vm1, %v358_v2  ;;  %s941_s14 = sshll.u32 %s1294_s22, 8  ;;  %s748_s26 = sshll.u32 %s344_s12, 4  ;;  %s1496_s26 = int_to_ptr.vmem [resolvable:$true] %s748_s26 }
  0x7b   : > { %961 = vmatprep.subr.mxu0 %v1236_v0  ;;  %966 = vmatprep.subr.mxu1 %v1236_v0  ;;  %s1619_s28 = smov (!%p349_p13, %s923_s28), 3  ;;  %v524_v9 = vsub.s32 0, %v523_v8  ;;  %s1494_s8 = scalar_lea.hbm %s1583_s5, %s941_s14 }
  0x7c   : > { %s351_s1 = scalar_lea.vmem %s1581_s3, %s1619_s28  ;;  %s719_s11 = scalar_lea.sflag [#allocation10], %s1453_s0 }
  0x7d   : > { %954 = vmatmul.mubr.msk.f32.vlgmr.msra.gmra.mxu0 %vm363_vm1, %v355_v3  ;;  %959 = vmatmul.mubr.msk.f32.vlgmr.msra.gmra.mxu1 %vm363_vm1, %v356_v4  ;;  %v361_v6 = vld [vmem:[%s351_s1] sm:$0x1]  ;;  %v362_v7 = vld [vmem:[%s351_s1 + $0x1] sm:$0x1]  ;;  %s1131_s15 = scalar_lea.vmem %s1496_s26, 256  ;;  %p1610_p8 = scmp.ne.s32.totalorder %s1597_s29, 0 }
  0x7e   : > { %963 = vmatprep.mubr.msk.f32.mxu0 %vm1237_vm0, %v1236_v0  ;;  %968 = vmatprep.mubr.msk.f32.mxu1 %vm1237_vm0, %v1236_v0  ;;  %vm518_vm2 = vcmp.eq.s32.totalorder %v361_v6, 0  ;;  %vm519_vm3 = vcmp.eq.s32.totalorder %v362_v7, 0  ;;  %p1132_p7 = scmp.ne.s32.totalorder %s1496_s26, %s1131_s15  ;;  %s1239_s23 = smov [#allocation9]  }
  0x7f   : > { %v520_v11 = vsel %vm518_vm2, 1, %v1238_v10  ;;  %v521_v12 = vsel %vm519_vm3, 1, %v1238_v10  ;;  %962 = vmatpush3.msra.mxu0 %v359_v35  ;;  %967 = vmatpush3.msra.mxu1 %v360_v36  ;;  %s1135_s9 = sshll.u32 %s1239_s23, 4  ;;  %s1136_s9 = int_to_ptr.vmem [resolvable:$false] %s1135_s9 }
  0x80   : > { %v525_v13 = vrot.slane %v520_v11, %v524_v9  ;;  %v529_v14 = vrot.slane %v521_v12, %v524_v9  ;;  %p1133_p10 = pnand %p1132_p7, %p1610_p8  ;;  %s1137_s16 = scalar_lea.vmem %s1136_s9, 512 }
  0x81   : > { %p1138_p3 = scmp.lt.s32.totalorder %s1496_s26, %s1136_s9  ;;  %p1139_p9 = scmp.lt.s32.totalorder %s1137_s16, %s1131_s15 }
  0x82   : > { %vm530_vm4 = vcmp.eq.s32.totalorder %v525_v13, 1  ;;  %vm531_vm5 = vcmp.eq.s32.totalorder %v529_v14, 1  ;;  %p1134_p1 = pneg %p1133_p10 }
  0x83   : > { %p1140_p6 = por %p1139_p9, %p1138_p3 }
  0x85   : > { %p1141_p12 = pnand %p1140_p6, %p1134_p1 }
 0x13d   : > { %v436_v15 = vpop.f32.mrf.mxu0  ;;  %v512_v16 = vpop.f32.mrf.mxu1 }
 0x13e   : > { %v516_v17 = vmul.f32 0.17677669, %v436_v15  ;;  %v517_v18 = vmul.f32 0.17677669, %v512_v16 }
 0x13f   : > { %v955_v19 = vpop.f32.mrf.mxu0  ;;  %v960_v20 = vpop.f32.mrf.mxu1 }
 0x140   : > { %v532_v21 = vsel %vm530_vm4, -1e+09, %v516_v17  ;;  %v533_v22 = vsel %vm531_vm5, -1e+09, %v517_v18 }
 0x141   : > { %v535_v23 = vsel %vm534_vm6, %v532_v21, -inf  ;;  %v538_v24 = vsel %vm534_vm6, %v533_v22, -inf }
 0x142   : > { %536 = vmax.xlane.f32.xlu0 %v535_v23 }
 0x146   : > { %539 = vmax.xlane.f32.xlu0 %v538_v24 }
 0x1cb   : > { %v537_v25 = vpop.xlane.xlu0 %536 }
 0x1cc   : > { %v541_v26 = vsub.f32 %v532_v21, %v537_v25 }
 0x1ce   : > { %v543_v27 = vmul.f32 1.442695, %v541_v26 }
 0x1cf   : > { %v540_v28 = vpop.xlane.xlu0 %539 }
 0x1d0   : > { %1039 = vpow2.f32 %v543_v27  ;;  %v542_v29 = vsub.f32 %v533_v22, %v540_v28 }
 0x1d2   : > { %v545_v30 = vmul.f32 1.442695, %v542_v29 }
 0x1d4   : > { %1041 = vpow2.f32 %v545_v30 }
 0x1dd   : > { %v1040_v31 = vpop.eup %1039 }
 0x1de   : > { %v547_v32 = vsel %vm534_vm6, %v1040_v31, 0.0 }
 0x1df   : > { %548 = vadd.xlane.f32.xlu1 %v547_v32 }
 0x1e1   : > { %v1042_v33 = vpop.eup %1041 }
 0x1e2   : > { %v550_v34 = vsel %vm534_vm6, %v1042_v33, 0.0 }
 0x1e3   : > { %551 = vadd.xlane.f32.xlu1 %v550_v34 }
 0x268   : > { %v549_v37 = vpop.xlane.xlu1 %548 }
 0x269   : > { %1043 = vrcp.f32 %v549_v37 }
 0x26c   : > { %v552_v38 = vpop.xlane.xlu1 %551 }
 0x26d   : > { %1045 = vrcp.f32 %v552_v38 }
 0x276   : > { %v1044_v39 = vpop.eup %1043 }
 0x277   : > { %v555_v40 = vmul.f32 %v1044_v39, %v549_v37 }
 0x279   : > { %v557_v41 = vsub.f32 2.0, %v555_v40 }
 0x27a   : > { %v1046_v42 = vpop.eup %1045 }
 0x27b   : > { %v559_v43 = vmul.f32 %v1044_v39, %v557_v41  ;;  %v556_v44 = vmul.f32 %v1046_v42, %v552_v38 }
 0x27d   : > { %v561_v45 = vmul.f32 %v1040_v31, %v559_v43  ;;  %v558_v46 = vsub.f32 2.0, %v556_v44 }
 0x27f   : > { %709 = vst.msk [vmem:[%s344_s12] sm:$0xff] %vm534_vm6, %v561_v45  ;;  %v560_v47 = vmul.f32 %v1046_v42, %v558_v46  ;;  %964 = vmatmul.mubr.msk.f32.vlgmr.msra.gmra.mxu0 %vm534_vm6, %v561_v45 }
 0x281   : > { %v562_v48 = vmul.f32 %v1042_v33, %v560_v47 }
 0x283   : > { %710 = vst.msk [vmem:[%s344_s12 + $0x8] sm:$0xff] %vm534_vm6, %v562_v48  ;;  %969 = vmatmul.mubr.msk.f32.vlgmr.msra.gmra.mxu1 %vm534_vm6, %v562_v48 }
 0x284   : > { %1144 = shalt.err (!%p1141_p12)
}
 0x285   : > { %s1145_s10 = scalar_lea.hbm %s1494_s8, 256  ;;  %s1149_s17 = scalar_lea.hbm %s1583_s5, 512 }
 0x286   : > { %p1146_p0 = scmp.ne.s32.totalorder %s1494_s8, %s1145_s10  ;;  %p1150_p2 = scmp.lt.s32.totalorder %s1494_s8, %s1583_s5 }
 0x287   : > { %p1151_p5 = scmp.lt.s32.totalorder %s1149_s17, %s1145_s10 }
 0x288   : > { %p1147_p11 = pnand %p1146_p0, %p1610_p8 }
 0x289   : > { %p1152_p13 = por %p1151_p5, %p1150_p2 }
 0x28a   : > { %p1148_p4 = pneg %p1147_p11 }
 0x28c   : > { %p1153_p7 = pnand %p1152_p13, %p1148_p4 }
 0x28e   : > { %1156 = shalt.err (!%p1153_p7)
}
 0x28f   : > { %s1240_s6 = smov 128   ;;  %s1241_s12 = smov 8  }
 0x290   : > { %978 = dma.vmem_to_hbm [thread:$0]  (%p1610_p8), %s1496_s26, 256, %s1494_s8, %s719_s11, %s1240_s6, %s1240_s6, %s1241_s12  }
 0x291   : > { %s337_s13 = scalar_lea.vmem [#allocation8], %s1456_s20  ;;  %s1533_s9 = scalar_lea.hbm %s1582_s4, %s941_s14 }
 0x292   : > { %s732_s7 = sshll.u32 %s337_s13, 4  ;;  %s714_s20 = scalar_lea.sflag [#allocation4], %s1453_s0  ;;  %s1526_s7 = int_to_ptr.vmem [resolvable:$true] %s732_s7 }
 0x293   : > { %s1157_s26 = scalar_lea.vmem %s1526_s7, 256  ;;  %s1242_s8 = smov [#allocation8]  }
 0x294   : > { %p1158_p10 = scmp.ne.s32.totalorder %s1526_s7, %s1157_s26  ;;  %s1161_s11 = sshll.u32 %s1242_s8, 4  ;;  %s1162_s11 = int_to_ptr.vmem [resolvable:$false] %s1161_s11 }
 0x295   : > { %s1163_s16 = scalar_lea.vmem %s1162_s11, 512  ;;  %p1164_p9 = scmp.lt.s32.totalorder %s1526_s7, %s1162_s11 }
 0x296   : > { %p1159_p1 = pnand %p1158_p10, %p1610_p8  ;;  %p1165_p6 = scmp.lt.s32.totalorder %s1163_s16, %s1157_s26 }
 0x298   : > { %p1160_p3 = pneg %p1159_p1  ;;  %p1166_p12 = por %p1165_p6, %p1164_p9 }
 0x29a   : > { %p1167_p0 = pnand %p1166_p12, %p1160_p3 }
 0x33f   : > { %v632_v49 = vpop.f32.mrf.mxu0 }
 0x340   : > { %711 = vst.msk [vmem:[%s337_s13] sm:$0xff] %vm363_vm1, %v632_v49 }
 0x341   : > { %v965_v50 = vpop.f32.mrf.mxu0 }
 0x343   : > { %v705_v51 = vpop.f32.mrf.mxu1 }
 0x344   : > { %712 = vst.msk [vmem:[%s337_s13 + $0x8] sm:$0xff] %vm363_vm1, %v705_v51 }
 0x345   : > { %v970_v52 = vpop.f32.mrf.mxu1 }
 0x346   : > { %1170 = shalt.err (!%p1167_p0)
}
 0x347   : > { %s1171_s22 = scalar_lea.hbm %s1533_s9, 256  ;;  %s1175_s10 = scalar_lea.hbm %s1582_s4, 512 }
 0x348   : > { %p1172_p11 = scmp.ne.s32.totalorder %s1533_s9, %s1171_s22  ;;  %p1176_p5 = scmp.lt.s32.totalorder %s1533_s9, %s1582_s4 }
 0x349   : > { %p1177_p13 = scmp.lt.s32.totalorder %s1175_s10, %s1171_s22 }
 0x34a   : > { %p1173_p4 = pnand %p1172_p11, %p1610_p8 }
 0x34b   : > { %p1178_p7 = por %p1177_p13, %p1176_p5 }
 0x34c   : > { %p1174_p2 = pneg %p1173_p4 }
 0x34e   : > { %p1179_p10 = pnand %p1178_p7, %p1174_p2 }
 0x350   : > { %1182 = shalt.err (!%p1179_p10)
}
 0x351   : > { %977 = dma.vmem_to_hbm [thread:$0]  (%p1610_p8), %s1526_s7, 256, %s1533_s9, %s714_s20, %s1240_s6, %s1240_s6, %s1241_s12  }
 0x352 PF: > { %s763_s17 = sand.u32 1, %s1217_s18   ;;  %p1611_p1 = scmp.ne.s32.totalorder %s1598_s30, 0 }
 0x353   : > { %p1612_p3 = scmp.ge.s32.totalorder %s1229_s21, 2  ;;  %s764_s25 = scalar_lea.sflag [#allocation4], %s763_s17 }
 0x355   : > { %p992_p9 = pnand %p1612_p3, %p1611_p1 }
 0x357   : > { %p993_p6 = pneg %p992_p9 }
 0x359   : > { %1208 = dma.done.wait (%p993_p6), %s764_s25, 256  }
 0x35a   : > { %1210 = vsyncadd (%p993_p6), %s764_s25, 4294967040  ;;  %s773_s1 = scalar_lea.sflag [#allocation10], %s763_s17 }
 0x35b   : > { %1212 = dma.done.wait (%p993_p6), %s773_s1, 256  }
 0x35c   : > { %1214 = vsyncadd (%p993_p6), %s773_s1, 4294967040  ;;  %s1613_s29 = sld [smem:[#allocation15_spill]]  ;;  %p25_p8 = scmp.ge.s32.totalorder %s1298_s24, 4  }
 0x35d   : > { %s1614_s20 = sld [smem:[#allocation16_spill]]  ;;  %s1615_s18 = smov %s1221_s19 }
 0x35e   : > { %s1617_s21 = smov %s1298_s24  ;;  %27 = sbr.rel (!%p25_p8) target bundleno = 12 (0xc), region = 125 }
 0x362   : > { %s1616_s19 = smov %s1613_s29 }
 0x363   :  { %778 = vsyncpa [#allocation3], 1 }
 0x364   :  { %780 = vsyncpa [#allocation3 + $0x1], 1 }
 0x365   :  { %781 = vsyncpa [#allocation6], 1 }
 0x366   :  { %783 = vsyncpa [#allocation6 + $0x1], 1 }
 0x367   :  { %784 = vsyncpa [#allocation4], 1 }
 0x368   :  { %786 = vsyncpa [#allocation4 + $0x1], 1 }
 0x369   :  { %787 = vsyncpa [#allocation10], 1 }
 0x36a   :  { %789 = vsyncpa [#allocation10 + $0x1], 1 }

</bundles_post_ra>
